<compile_context>
chip_gen: v7x
topology: tpu7x:2x2x1
jax: 0.10.0
libtpu: 0.0.40
codegen_flags: <defaults>
</compile_context>

<pallas_src>
import jax
import jax.numpy as jnp
from jax.experimental import pallas as pl
from jax.experimental.pallas import tpu as pltpu


def _round_up(x, m):
    return ((x + m - 1) // m) * m


def _vmem_capacity_bytes():
    # Generation-aware physical VMEM (v5e/v6e: 128 MiB, v7x: 64 MiB per TC).
    try:
        return int(pltpu.get_tpu_info().vmem_capacity_bytes)
    except Exception:
        return 64 * 1024 * 1024          # conservative (v7x-sized) fallback


def _choose_tile_and_vmem(N, D, PL, itemsize):
    """Pick the lane tile TN and the scoped-VMEM limit for this generation."""
    cap = _vmem_capacity_bytes()
    # Scoped-VMEM budget: up to 64 MiB on 128 MiB parts (v5e/v6e), ~70% of
    # the 64 MiB physical VMEM on v7x so double buffering never spills.
    budget = min(64 * 1024 * 1024, int(0.70 * cap))

    # Resident operands: one VMEM-padded copy of W and bias.
    resident = (_round_up(PL, 8) * _round_up(D, 128)
                + _round_up(PL, 8) * 128) * itemsize
    usable = max(budget - resident - (2 << 20), 4 << 20)

    # Double-buffered x tile (D, TN) + out tile (PL, TN), bytes per lane col.
    per_lane = 2 * (_round_up(D, 8) + _round_up(PL, 8)) * itemsize
    tn_cap = max(128, (usable // per_lane) // 128 * 128)

    # Big tiles amortise the fixed per-grid-step cost; 16384 lanes is far
    # past the knee on every generation (>= 3 MB/step even at D=32, PL=16).
    tn = int(min(16384, tn_cap))

    n_ceil = _round_up(N, 128)
    if tn >= n_ceil:
        if n_ceil >= 256:
            # Split into (at least) two steps so the "parallel" grid axis can
            # shard across both TensorCores on v7x.
            tn = max(128, _round_up(pl.cdiv(N, 2), 128))
        else:
            # Tiny problem: a single block (full-dim block when N < 128).
            tn = n_ceil if N >= 128 else N

    # Actual VMEM need for the chosen tile (+ margin), capped per generation.
    tn_pad = _round_up(tn, 128)
    need = 2 * (_round_up(D, 8) + _round_up(PL, 8)) * tn_pad * itemsize + resident
    vmem_limit = int(min(min(64 * 1024 * 1024, int(0.90 * cap)),
                         max(8 * 1024 * 1024, need + (2 << 20))))
    return tn, vmem_limit


def _mask_head_matmul_kernel(x_ref, w_ref, b_ref, o_ref):
    # x_ref: (D, TN)   w_ref: (PL, D)   b_ref: (PL, 1)   o_ref: (PL, TN)
    acc = jnp.dot(w_ref[...], x_ref[...],
                  preferred_element_type=jnp.float32)        # MXU, (PL, TN)
    acc = acc + b_ref[...].astype(jnp.float32)                # bias over lanes
    o_ref[...] = acc.astype(o_ref.dtype)


def pretrain_mask_head_lane_major(x2, weight, bias):
    """Relayout-free core: x2 [D, N] -> [PL, N], Out = W @ X + bias."""
    D, N = x2.shape
    PL = weight.shape[0]
    itemsize = jnp.dtype(x2.dtype).itemsize
    tn, vmem_limit = _choose_tile_and_vmem(N, D, PL, itemsize)
    grid = (pl.cdiv(N, tn),)                  # ragged last block is masked

    cost = pl.CostEstimate(
        flops=2 * PL * D * N,
        transcendentals=0,
        bytes_accessed=(D * N + PL * N + PL * D + PL) * itemsize,
    )

    bias2d = bias.reshape(PL, 1)

    return pl.pallas_call(
        _mask_head_matmul_kernel,
        out_shape=jax.ShapeDtypeStruct((PL, N), x2.dtype),
        grid_spec=pltpu.PrefetchScalarGridSpec(
            num_scalar_prefetch=0,
            grid=grid,
            in_specs=[
                pl.BlockSpec((D, tn), lambda n: (0, n)),      # lane-dense x tile
                # W / bias are grid-invariant (constant index_map), so the
                # pipeline re-uses the same block across steps without
                # re-issuing DMAs; their extra pipeline buffer is <= a few
                # hundred KB even at d_model=512.
                # TODO(synk): pipeline_mode=pl.Buffered(1) would drop that
                # extra buffer once validated on the target JAX build.
                pl.BlockSpec((PL, D), lambda n: (0, 0)),      # resident W
                pl.BlockSpec((PL, 1), lambda n: (0, 0)),      # resident bias
            ],
            out_specs=pl.BlockSpec((PL, tn), lambda n: (0, n)),
        ),
        compiler_params=pltpu.CompilerParams(
            dimension_semantics=("parallel",),                # megacore-shardable
            vmem_limit_bytes=vmem_limit,
        ),
        cost_estimate=cost,
    )(x2, weight, bias2d)


def pretrain_mask_head(x, weight, bias):
    """x: [B, C, D, P]; weight: [PL, D]; bias: [PL] -> [B, C, PL, P]."""
    B, C, D, P = x.shape
    PL = weight.shape[0]
    assert weight.shape == (PL, D)
    assert bias.shape == (PL,)

    N = B * C * P
    # The module interface fixes d_model in the middle on input and patch_len
    # in the middle on output, so one input and one output relayout pass are
    # unavoidable here.  In a full model, fuse these into producer/consumer
    # layouts and call pretrain_mask_head_lane_major directly.
    x2 = jnp.transpose(x, (2, 0, 1, 3)).reshape(D, N)         # X[d, (b,c,p)]
    out2 = pretrain_mask_head_lane_major(x2, weight, bias)    # [PL, N]
    out = out2.reshape(PL, B, C, P)
    return jnp.transpose(out, (1, 2, 0, 3))                   # [B, C, PL, P]


def _reference(x, weight, bias):
    # Pure-JAX reference of the PyTorch forward (eval mode).
    return jnp.einsum("bcdp,ld->bclp", x, weight) + bias[None, None, :, None]


if __name__ == "__main__":
    # Small, module-consistent shapes.
    B, C = 2, 4            # bs, nvars
    D = 32                 # d_model
    P = 8                  # num_patch
    PL = 16                # patch_len

    key = jax.random.PRNGKey(0)
    kx, kw, kb = jax.random.split(key, 3)

    x = jax.random.normal(kx, (B, C, D, P), dtype=jnp.float32)

    # Deterministic nn.Linear-style init: U(-1/sqrt(d_model), 1/sqrt(d_model))
    bound = 1.0 / (D ** 0.5)
    weight = jax.random.uniform(kw, (PL, D), jnp.float32, -bound, bound)
    bias = jax.random.uniform(kb, (PL,), jnp.float32, -bound, bound)

    fn = jax.jit(pretrain_mask_head)
    out = jax.block_until_ready(fn(x, weight, bias))

    ref = _reference(x, weight, bias)
    assert out.shape == (B, C, PL, P)
    assert jnp.allclose(out, ref, atol=1e-5, rtol=1e-5)

    print("KERNEL_OK")
</pallas_src>

<mosaic_0001>
module attributes {stable_mosaic.version = 11 : i64} {
  func.func @_mask_head_matmul_kernel(%arg0: i32, %arg1: memref<32x64xf32, #tpu.memory_space<vmem>>, %arg2: memref<16x32xf32, #tpu.memory_space<vmem>>, %arg3: memref<16x1xf32, #tpu.memory_space<vmem>>, %arg4: memref<16x64xf32, #tpu.memory_space<vmem>>) attributes {dimension_semantics = [#tpu.dimension_semantics<parallel>], iteration_bounds = array<i64: 1>, scalar_prefetch = 0 : i64, scratch_operands = 0 : i64, tpu.core_type = #tpu.core_type<tc>, window_params = [{transform_indices = @transform_0, window_bounds = array<i64: 32, 64>}, {pipeline_mode = #tpu.pipeline_mode<synchronous>, transform_indices = @transform_1, window_bounds = array<i64: 16, 32>}, {pipeline_mode = #tpu.pipeline_mode<synchronous>, transform_indices = @transform_2, window_bounds = array<i64: 16, 1>}, {transform_indices = @transform_3, window_bounds = array<i64: 16, 64>}]} {
    %c0 = arith.constant 0 : index
    %c0_0 = arith.constant 0 : index
    %0 = vector.load %arg2[%c0, %c0_0] : memref<16x32xf32, #tpu.memory_space<vmem>>, vector<16x32xf32>
    %c0_1 = arith.constant 0 : index
    %c0_2 = arith.constant 0 : index
    %1 = vector.load %arg1[%c0_1, %c0_2] : memref<32x64xf32, #tpu.memory_space<vmem>>, vector<32x64xf32>
    %cst = arith.constant dense<0.000000e+00> : vector<16x64xf32>
    %2 = tpu.matmul %0, %1, %cst {dimension_numbers = #tpu.dot_dimension_numbers<[1], [0], [0], [1], [0, 0, 1, 1], [], []>} : vector<16x32xf32>, vector<32x64xf32>, vector<16x64xf32> -> vector<16x64xf32>
    %c0_3 = arith.constant 0 : index
    %c0_4 = arith.constant 0 : index
    %3 = vector.load %arg3[%c0_3, %c0_4] : memref<16x1xf32, #tpu.memory_space<vmem>>, vector<16x1xf32>
    %4 = vector.broadcast %3 : vector<16x1xf32> to vector<16x64xf32>
    %5 = arith.addf %2, %4 : vector<16x64xf32>
    %c0_5 = arith.constant 0 : index
    %c0_6 = arith.constant 0 : index
    %6 = vector.load %arg4[%c0_5, %c0_6] : memref<16x64xf32, #tpu.memory_space<vmem>>, vector<16x64xf32>
    tpu.vector_store %arg4[%c0_5, %c0_6], %5 {strides = array<i32>} : memref<16x64xf32, #tpu.memory_space<vmem>>, vector<16x64xf32>,
    return
  }
  func.func @transform_0(%arg0: i32) -> (i32, i32) {
    %c0_i32 = arith.constant 0 : i32
    %c0_i32_0 = arith.constant 0 : i32
    return %c0_i32, %arg0 : i32, i32
  }
  func.func @transform_1(%arg0: i32) -> (i32, i32) {
    %c0_i32 = arith.constant 0 : i32
    %c0_i32_0 = arith.constant 0 : i32
    %c0_i32_1 = arith.constant 0 : i32
    return %c0_i32, %c0_i32_0 : i32, i32
  }
  func.func @transform_2(%arg0: i32) -> (i32, i32) {
    %c0_i32 = arith.constant 0 : i32
    %c0_i32_0 = arith.constant 0 : i32
    %c0_i32_1 = arith.constant 0 : i32
    return %c0_i32, %c0_i32_0 : i32, i32
  }
  func.func @transform_3(%arg0: i32) -> (i32, i32) {
    %c0_i32 = arith.constant 0 : i32
    %c0_i32_0 = arith.constant 0 : i32
    return %c0_i32, %arg0 : i32, i32
  }
}

</mosaic_0001>

<bundles_post_ra>
// kernel: pretrain_mask_head.1
= control target key start
LH: loop header
LB: loop body
LE: loop exit
PB: predicated region body
PF: predicated region fallthrough
CT: control target
= control target key end

     0   :  { %vm32_vm0 = vcmask 261120   ;;  %v150_v3 = vmov 0   ;;  %vm114_vm1 = vcmask 523264   ;;  %s203_s0 = inlined_call_operand.vmem [shape: f32[32,64], index: 0, kind: input, shape index: {}]   ;;  %s204_s1 = inlined_call_operand.vmem [shape: f32[16,32], index: 1, kind: input, shape index: {}]   ;;  %s205_s2 = inlined_call_operand.vmem [shape: f32[16,1], index: 2, kind: input, shape index: {}]   ;;  %s206_s3 = inlined_call_operand.vmem [shape: f32[16,64], index: 3, kind: output, shape index: {}]  }
   0x1   :  { %v16_v0 = vld [vmem:[%s203_s0] sm:$0xff]  ;;  %v17_v1 = vld [vmem:[%s203_s0 + $0x8] sm:$0xff]  ;;  %v18_v2 = vld [vmem:[%s203_s0 + $0x10] sm:$0xff]  ;;  %149 = vset.pattern.permute.xlu0 %v150_v3 }
   0x2   :  { %v140_v4 = vpack.c.bf16 %v17_v1, %v16_v0  ;;  %v19_v5 = vld [vmem:[%s203_s0 + $0x18] sm:$0xff]  ;;  %v14_v6 = vld [vmem:[%s204_s1] sm:$0xff]  ;;  %v21_v9 = vld [vmem:[%s205_s2 + $0x8] sm:$0xff] }
   0x3   :  { %v144_v7 = vpack.c.bf16 %v19_v5, %v18_v2  ;;  %137 = vmatprep.mubr.msk.f32.mxu0 %vm32_vm0, %v14_v6  ;;  %v20_v8 = vld [vmem:[%s205_s2] sm:$0xff]  ;;  %v15_v10 = vld [vmem:[%s204_s1 + $0x8] sm:$0xff] }
   0x4   :  { %141 = vmatprep.subr.bf16.mxu0 %v140_v4  ;;  %24 = vperm.xlu0 %149, %v20_v8  }
   0x5   :  { %143 = vmatpush3.bf16.msra.mxu0 %v140_v4 }
   0x6   :  { %145 = vmatprep.subr.bf16.mxu0 %v144_v7 }
   0x8   :  { %29 = vperm.xlu0 %149, %v21_v9  }
   0x9   :  { %147 = vmatpush3.bf16.msra.mxu0 %v144_v7 }
   0xc   :  { %138 = vmatmul.mubr.msk.f32.vlgmr.msra.gmra.mrb[0].mxu0 %vm32_vm0, %v15_v10 }
  0x83   :  { %v25_v11 = vpop.permute.xlu0 %24 }
  0x87   :  { %v30_v12 = vpop.permute.xlu0 %29 }
  0xdf   :  { %v139_v13 = vpop.f32.mrb[0].mxu0 }
  0xe0   :  { %v111_v14 = vadd.f32 %v139_v13, %v30_v12  ;;  %v105_v15 = vpop.f32.mrb[1].mxu0 }
  0xe1   :  { %v106_v16 = vadd.f32 %v105_v15, %v25_v11 }
  0xe2   :  { %116 = vst.msk [vmem:[%s206_s3 + $0x8] sm:$0xff] %vm114_vm1, %v111_v14 }
  0xe3   :  { %115 = vst.msk [vmem:[%s206_s3] sm:$0xff] %vm114_vm1, %v106_v16 }

</bundles_post_ra>
